<compile_context>
chip_gen: v7x
topology: tpu7x:2x2x1
jax: 0.10.0
libtpu: 0.0.40
codegen_flags: <defaults>
</compile_context>

<pallas_src>
import functools
import math

import jax
import jax.numpy as jnp
from jax import lax
from jax.experimental import pallas as pl
from jax.experimental.pallas import tpu as pltpu

# Packed-table row layout: 4 vocab segments, then the loc projection rows.
VOCABS = (26, 22, 4, 3)          # operator, device, provider, sta_id
OFFS = (0, 26, 48, 52)           # row offset of each vocab segment
ROW_LOC0 = 55                    # w_loc row 0   (carries loc_mean[0])
ROW_LOC1 = 56                    # w_loc row 1   (carries loc_mean[1])
ROW_ONE = 57                     # b_loc row     (picked by a constant 1)
NV = 64                          # 58 used rows padded to a multiple of 16


def embedder_kernel(ids_ref, loc_ref, t1_ref, b1_ref, w2_ref, b2_ref, o_ref,
                    xs_ref, hs_ref, *, L):
    """One grid step = TB whole batches flattened to TBL = TB*L rows.

    ids_ref : (TBL, 4)       int32 ids, already offset into the packed table
    loc_ref : (TBL, 2)       f32 raw loc_mean values (per row)
    t1_ref  : (NV, 3*2E)     bf16 tables+loc precomposed with the 3 conv1 taps
    b1_ref  : (1, 2E)        f32 conv1 bias
    w2_ref  : (2E, 3*E)      bf16 conv2 taps stacked along N
    b2_ref  : (1, E)         f32 conv2 bias
    o_ref   : (TBL, E)       f32 output
    xs_ref  : (TBL+2, 3*2E)  f32 scratch: conv1 stacked tap results, shifted +1
    hs_ref  : (TBL+2, 3*E)   f32 scratch: conv2 stacked tap results, shifted +1
    """
    TBL = o_ref.shape[0]
    C1 = b1_ref.shape[1]                 # 2E
    C2 = b2_ref.shape[1]                 # E

    # Zero the two pad rows of each scratch so the shifted tap reads at the
    # tile edges are well-defined (they are additionally masked below).
    zero1 = jnp.zeros((1, xs_ref.shape[1]), jnp.float32)
    xs_ref[0:1, :] = zero1
    xs_ref[TBL + 1:TBL + 2, :] = zero1
    zero2 = jnp.zeros((1, hs_ref.shape[1]), jnp.float32)
    hs_ref[0:1, :] = zero2
    hs_ref[TBL + 1:TBL + 2, :] = zero2

    # --- fused gather + concat + loc-proj + conv1 taps: ONE bf16 matmul ----
    ids = ids_ref[...]                                          # (TBL, 4) i32
    col = lax.broadcasted_iota(jnp.int32, (TBL, NV), 1)
    hit = ((ids[:, 0:1] == col) | (ids[:, 1:2] == col)
           | (ids[:, 2:3] == col) | (ids[:, 3:4] == col))
    loc = loc_ref[...]                                          # (TBL, 2) f32
    ohx = jnp.where(hit, 1.0, 0.0)                              # f32 one-hot
    ohx = jnp.where(col == ROW_LOC0, loc[:, 0:1], ohx)          # loc_mean[0]
    ohx = jnp.where(col == ROW_LOC1, loc[:, 1:2], ohx)          # loc_mean[1]
    ohx = jnp.where(col == ROW_ONE, 1.0, ohx)                   # loc bias
    ohx = ohx.astype(jnp.bfloat16)                              # single cast
    s1 = jnp.dot(ohx, t1_ref[...],
                 preferred_element_type=jnp.float32)            # (TBL, 3*2E)
    xs_ref[pl.ds(1, TBL), :] = s1                               # rows 1..TBL

    # --- Conv1d(k=3, pad=1) tap-validity masks (batch boundaries) -----------
    pos = lax.broadcasted_iota(jnp.int32, (TBL, 1), 0) % L
    first = pos == 0                 # tap k=0 (previous row) invalid
    last = pos == (L - 1)            # tap k=2 (next row) invalid

    def combine(src_ref, c, bias):
        # out[i] = src[i][0:c] + src[i+1][c:2c] + src[i+2][2c:3c] (+ masks),
        # where src[j] holds the stacked per-tap matmul result of input row j-1.
        tap0 = src_ref[pl.ds(0, TBL), 0:c]
        tap1 = src_ref[pl.ds(1, TBL), c:2 * c]
        tap2 = src_ref[pl.ds(2, TBL), 2 * c:3 * c]
        return (jnp.where(first, 0.0, tap0) + tap1
                + jnp.where(last, 0.0, tap2) + bias)

    # ff[0]: Conv1d(5E -> 2E, 3, 1, 1) + LeakyReLU(0.01), math in f32.
    h = combine(xs_ref, C1, b1_ref[...])
    h = jnp.where(h >= 0, h, 0.01 * h)

    # ff[2]: Conv1d(2E -> E, 3, 1, 1): one stacked-tap matmul + combine.
    s2 = jnp.dot(h.astype(jnp.bfloat16), w2_ref[...],
                 preferred_element_type=jnp.float32)            # (TBL, 3*E)
    hs_ref[pl.ds(1, TBL), :] = s2
    o_ref[...] = combine(hs_ref, C2, b2_ref[...]).astype(o_ref.dtype)


def _build_weights(params, E):
    """Packed (NV, 5E) table (embeddings + loc proj) precomposed with the 3
    conv1 taps -> (NV, 3*2E) bf16, plus conv2 taps stacked -> (2E, 3*E) bf16."""
    op, dev, prov, sta = (params["op_emb"], params["dev_emb"],
                          params["prov_emb"], params["sta_emb"])
    loc_rows = jnp.concatenate([params["w_loc"], params["b_loc"][None, :]], 0)
    blocks = [
        jnp.pad(op,       ((0, 0), (0 * E, 4 * E))),
        jnp.pad(dev,      ((0, 0), (1 * E, 3 * E))),
        jnp.pad(prov,     ((0, 0), (2 * E, 2 * E))),
        jnp.pad(sta,      ((0, 0), (3 * E, 1 * E))),
        jnp.pad(loc_rows, ((0, 0), (4 * E, 0 * E))),
    ]
    t5 = jnp.concatenate(blocks, axis=0).astype(jnp.float32)      # (58, 5E)
    t5 = jnp.pad(t5, ((0, NV - t5.shape[0]), (0, 0)))             # (NV, 5E)
    # Precompose with the conv1 taps in f32, stack along N, one bf16 cast.
    t1 = jnp.concatenate(
        [t5 @ params["w1"][k].astype(jnp.float32) for k in range(3)],
        axis=1)                                                   # (NV, 3*2E)
    w2s = jnp.concatenate([params["w2"][k] for k in range(3)], axis=1)
    return t1.astype(jnp.bfloat16), w2s.astype(jnp.bfloat16)     # (2E, 3*E)


def _vmem_budget_bytes():
    """~75% of this generation's VMEM (64 MiB on v7x, 128 MiB on v5e/v6e)."""
    cap = 64 * 1024 * 1024
    try:
        info = pltpu.get_tpu_info()
        cap = int(getattr(info, "vmem_capacity_bytes", cap))
    except Exception:
        pass
    return int(min(cap * 3 // 4, 112 * 1024 * 1024))


def _choose_batch_tile(B, L, vmem_budget, batch_tile):
    """Pick TB (batches per grid step) so TBL=TB*L is a multiple of 8, fits the
    VMEM budget, targets 4K-8K rows, and leaves >=2 grid steps when B >= 2."""
    unit = 8 // math.gcd(L, 8)                 # TB granularity: TB*L % 8 == 0
    if batch_tile is not None:
        tb = max(unit, (-(-batch_tile // unit)) * unit)
    else:
        per_row = 10 * 1024                    # conservative VMEM bytes / row
        target_rows = min(8192, max(L * unit, vmem_budget // per_row))
        tb = max(unit, ((target_rows // L) // unit) * unit)
        if B >= 2 * unit:                      # keep both v7x TCs busy
            tb = min(tb, max(unit, ((-(-B // 2)) // unit) * unit))
    tb = min(tb, max(unit, (-(-B // unit)) * unit))
    assert (tb * L) % 8 == 0
    return tb


def embedder_forward(params, meta, loc_mean, *, batch_tile=None):
    """meta: (B, 4, L) int ids; loc_mean: (B, 2, 1) f32. Returns (B, E, L) f32."""
    B, _, L = meta.shape
    E = params["op_emb"].shape[1]

    # --- tiny wrapper-side glue (no E-wide slabs, no big intermediates) -----
    offs = jnp.array(OFFS, jnp.int32)
    ids = (jnp.transpose(meta, (0, 2, 1)).reshape(B * L, 4).astype(jnp.int32)
           + offs[None, :])                                        # (B*L, 4)
    loc_rows = jnp.repeat(loc_mean[:, :, 0].astype(jnp.float32), L, axis=0)
    t1, w2s = _build_weights(params, E)
    b1 = params["b1"][None, :].astype(jnp.float32)
    b2 = params["b2"][None, :].astype(jnp.float32)

    # --- batch tiling sized against per-generation VMEM ---------------------
    vmem_budget = _vmem_budget_bytes()
    TB = _choose_batch_tile(B, L, vmem_budget, batch_tile)
    nbt = pl.cdiv(B, TB)
    Bp = nbt * TB
    if Bp != B:
        pad_rows = (Bp - B) * L
        ids = jnp.pad(ids, ((0, pad_rows), (0, 0)))
        loc_rows = jnp.pad(loc_rows, ((0, pad_rows), (0, 0)))
    TBL = TB * L

    flops = 2 * Bp * L * (NV * 3 * 2 * E + 2 * E * 3 * E)
    bytes_accessed = (ids.size * 4 + loc_rows.size * 4 + t1.size * 2
                      + w2s.size * 2 + b1.size * 4 + b2.size * 4
                      + Bp * L * E * 4)

    out_flat = pl.pallas_call(
        functools.partial(embedder_kernel, L=L),
        out_shape=jax.ShapeDtypeStruct((Bp * L, E), jnp.float32),
        grid=(nbt,),
        in_specs=[
            pl.BlockSpec((TBL, 4), lambda t: (t, 0)),           # ids
            pl.BlockSpec((TBL, 2), lambda t: (t, 0)),           # loc_mean rows
            pl.BlockSpec((NV, 6 * E), lambda t: (0, 0)),        # fused table
            pl.BlockSpec((1, 2 * E), lambda t: (0, 0)),         # b1
            pl.BlockSpec((2 * E, 3 * E), lambda t: (0, 0)),     # conv2 taps
            pl.BlockSpec((1, E), lambda t: (0, 0)),             # b2
        ],
        out_specs=pl.BlockSpec((TBL, E), lambda t: (t, 0)),
        scratch_shapes=[
            pltpu.VMEM((TBL + 2, 6 * E), jnp.float32),          # conv1 taps
            pltpu.VMEM((TBL + 2, 3 * E), jnp.float32),          # conv2 taps
        ],
        compiler_params=pltpu.CompilerParams(
            dimension_semantics=("parallel",),
            vmem_limit_bytes=vmem_budget,
        ),
        cost_estimate=pl.CostEstimate(
            flops=flops, transcendentals=0, bytes_accessed=bytes_accessed),
    )(ids, loc_rows, t1, b1, w2s, b2)

    out = out_flat[: B * L].reshape(B, L, E)
    return jnp.transpose(out, (0, 2, 1))       # PyTorch NCL layout: (B, E, L)


def init_params(key, embed_dim):
    ks = jax.random.split(key, 10)
    E = embed_dim
    return {
        "op_emb": jax.random.normal(ks[0], (26, E), jnp.float32) * 0.02,
        "dev_emb": jax.random.normal(ks[1], (22, E), jnp.float32) * 0.02,
        "prov_emb": jax.random.normal(ks[2], (4, E), jnp.float32) * 0.02,
        "sta_emb": jax.random.normal(ks[3], (3, E), jnp.float32) * 0.02,
        # loc_mean_proj: Conv1d(2, E, 1) -> (2, E) matmul weight + (E,) bias
        "w_loc": jax.random.normal(ks[4], (2, E), jnp.float32) * 0.1,
        "b_loc": jax.random.normal(ks[5], (E,), jnp.float32) * 0.1,
        # ff[0]: Conv1d(5E, 2E, 3, 1, 1) -> tap-major (3, 5E, 2E)
        "w1": jax.random.normal(ks[6], (3, 5 * E, 2 * E), jnp.float32) * 0.02,
        "b1": jax.random.normal(ks[7], (2 * E,), jnp.float32) * 0.02,
        # ff[2]: Conv1d(2E, E, 3, 1, 1) -> tap-major (3, 2E, E)
        "w2": jax.random.normal(ks[8], (3, 2 * E, E), jnp.float32) * 0.02,
        "b2": jax.random.normal(ks[9], (E,), jnp.float32) * 0.02,
    }


def _reference_forward(params, meta, loc_mean):
    """Pure-JAX f32 reference (lax.conv_general_dilated, NCL) for validation."""
    B, _, L = meta.shape
    E = params["op_emb"].shape[1]
    op_e = params["op_emb"][meta[:, 0, :]]
    dev_e = params["dev_emb"][meta[:, 1, :]]
    prov_e = params["prov_emb"][meta[:, 2, :]]
    sta_e = params["sta_emb"][meta[:, 3, :]]
    loc_e = loc_mean[:, :, 0] @ params["w_loc"] + params["b_loc"]
    loc_e = jnp.broadcast_to(loc_e[:, None, :], (B, L, E))
    mix = jnp.concatenate([op_e, dev_e, prov_e, sta_e, loc_e], axis=-1)
    mix_ncl = jnp.transpose(mix, (0, 2, 1))                       # (B, 5E, L)
    w1_oik = jnp.transpose(params["w1"], (2, 1, 0))               # (2E, 5E, 3)
    w2_oik = jnp.transpose(params["w2"], (2, 1, 0))               # (E, 2E, 3)
    h = lax.conv_general_dilated(
        mix_ncl, w1_oik, (1,), [(1, 1)], dimension_numbers=("NCH", "OIH", "NCH")
    ) + params["b1"][None, :, None]
    h = jnp.where(h >= 0, h, 0.01 * h)
    out = lax.conv_general_dilated(
        h, w2_oik, (1,), [(1, 1)], dimension_numbers=("NCH", "OIH", "NCH")
    ) + params["b2"][None, :, None]
    return out


if __name__ == "__main__":
    B, L, E = 2, 8, 32
    key = jax.random.PRNGKey(0)
    k_par, k_op, k_dev, k_prov, k_sta, k_loc = jax.random.split(key, 6)

    params = init_params(k_par, E)
    meta = jnp.stack(
        [
            jax.random.randint(k_op, (B, L), 0, 26),
            jax.random.randint(k_dev, (B, L), 0, 22),
            jax.random.randint(k_prov, (B, L), 0, 4),
            jax.random.randint(k_sta, (B, L), 0, 3),
        ],
        axis=1,
    ).astype(jnp.int32)                                   # (B, 4, L)
    loc_mean = jax.random.normal(k_loc, (B, 2, 1), jnp.float32)

    out = jax.block_until_ready(embedder_forward(params, meta, loc_mean))
    assert out.shape == (B, E, L), out.shape

    ref = jax.block_until_ready(_reference_forward(params, meta, loc_mean))
    max_err = float(jnp.max(jnp.abs(out - ref)))
    # bf16 MXU operands inside the kernel vs f32 reference -> looser tolerance
    assert jnp.allclose(out, ref, atol=5e-3, rtol=5e-3), max_err

    print("KERNEL_OK")
</pallas_src>

<mosaic_0001>
module attributes {stable_mosaic.version = 11 : i64} {
  func.func @embedder_kernel(%arg0: i32, %arg1: memref<8x4xi32, #tpu.memory_space<vmem>>, %arg2: memref<8x2xf32, #tpu.memory_space<vmem>>, %arg3: memref<64x192xbf16, #tpu.memory_space<vmem>>, %arg4: memref<1x64xf32, #tpu.memory_space<vmem>>, %arg5: memref<64x96xbf16, #tpu.memory_space<vmem>>, %arg6: memref<1x32xf32, #tpu.memory_space<vmem>>, %arg7: memref<8x32xf32, #tpu.memory_space<vmem>>, %arg8: memref<10x192xf32, #tpu.memory_space<vmem>>, %arg9: memref<10x96xf32, #tpu.memory_space<vmem>>) attributes {dimension_semantics = [#tpu.dimension_semantics<parallel>], iteration_bounds = array<i64: 2>, scalar_prefetch = 0 : i64, scratch_operands = 2 : i64, tpu.core_type = #tpu.core_type<tc>, window_params = [{transform_indices = @transform_0, window_bounds = array<i64: 8, 4>}, {transform_indices = @transform_1, window_bounds = array<i64: 8, 2>}, {pipeline_mode = #tpu.pipeline_mode<synchronous>, transform_indices = @transform_2, window_bounds = array<i64: 64, 192>}, {pipeline_mode = #tpu.pipeline_mode<synchronous>, transform_indices = @transform_3, window_bounds = array<i64: 1, 64>}, {pipeline_mode = #tpu.pipeline_mode<synchronous>, transform_indices = @transform_4, window_bounds = array<i64: 64, 96>}, {pipeline_mode = #tpu.pipeline_mode<synchronous>, transform_indices = @transform_5, window_bounds = array<i64: 1, 32>}, {transform_indices = @transform_6, window_bounds = array<i64: 8, 32>}]} {
    %cst = arith.constant 0.000000e+00 : f32
    %0 = vector.broadcast %cst : f32 to vector<1x192xf32>
    %c0 = arith.constant 0 : index
    %c0_0 = arith.constant 0 : index
    %1 = vector.load %arg8[%c0, %c0_0] : memref<10x192xf32, #tpu.memory_space<vmem>>, vector<1x192xf32>
    tpu.vector_store %arg8[%c0, %c0_0], %0 {strides = array<i32>} : memref<10x192xf32, #tpu.memory_space<vmem>>, vector<1x192xf32>,
    %c9 = arith.constant 9 : index
    %c0_1 = arith.constant 0 : index
    %2 = vector.load %arg8[%c9, %c0_1] : memref<10x192xf32, #tpu.memory_space<vmem>>, vector<1x192xf32>
    tpu.vector_store %arg8[%c9, %c0_1], %0 {strides = array<i32>} : memref<10x192xf32, #tpu.memory_space<vmem>>, vector<1x192xf32>,
    %cst_2 = arith.constant 0.000000e+00 : f32
    %3 = vector.broadcast %cst_2 : f32 to vector<1x96xf32>
    %c0_3 = arith.constant 0 : index
    %c0_4 = arith.constant 0 : index
    %4 = vector.load %arg9[%c0_3, %c0_4] : memref<10x96xf32, #tpu.memory_space<vmem>>, vector<1x96xf32>
    tpu.vector_store %arg9[%c0_3, %c0_4], %3 {strides = array<i32>} : memref<10x96xf32, #tpu.memory_space<vmem>>, vector<1x96xf32>,
    %c9_5 = arith.constant 9 : index
    %c0_6 = arith.constant 0 : index
    %5 = vector.load %arg9[%c9_5, %c0_6] : memref<10x96xf32, #tpu.memory_space<vmem>>, vector<1x96xf32>
    tpu.vector_store %arg9[%c9_5, %c0_6], %3 {strides = array<i32>} : memref<10x96xf32, #tpu.memory_space<vmem>>, vector<1x96xf32>,
    %c0_7 = arith.constant 0 : index
    %c0_8 = arith.constant 0 : index
    %6 = vector.load %arg1[%c0_7, %c0_8] : memref<8x4xi32, #tpu.memory_space<vmem>>, vector<8x4xi32>
    %7 = tpu.iota {dimensions = array<i32: 1>} : vector<8x64xi32>
    %8 = vector.extract_strided_slice %6 {offsets = [0, 0], sizes = [8, 1], strides = [1, 1]} : vector<8x4xi32> to vector<8x1xi32>
    %9 = vector.broadcast %8 : vector<8x1xi32> to vector<8x64xi32>
    %10 = arith.cmpi eq, %9, %7 : vector<8x64xi32>
    %11 = vector.extract_strided_slice %6 {offsets = [0, 1], sizes = [8, 1], strides = [1, 1]} : vector<8x4xi32> to vector<8x1xi32>
    %12 = vector.broadcast %11 : vector<8x1xi32> to vector<8x64xi32>
    %13 = arith.cmpi eq, %12, %7 : vector<8x64xi32>
    %14 = arith.ori %10, %13 : vector<8x64xi1>
    %15 = vector.extract_strided_slice %6 {offsets = [0, 2], sizes = [8, 1], strides = [1, 1]} : vector<8x4xi32> to vector<8x1xi32>
    %16 = vector.broadcast %15 : vector<8x1xi32> to vector<8x64xi32>
    %17 = arith.cmpi eq, %16, %7 : vector<8x64xi32>
    %18 = arith.ori %14, %17 : vector<8x64xi1>
    %19 = vector.extract_strided_slice %6 {offsets = [0, 3], sizes = [8, 1], strides = [1, 1]} : vector<8x4xi32> to vector<8x1xi32>
    %20 = vector.broadcast %19 : vector<8x1xi32> to vector<8x64xi32>
    %21 = arith.cmpi eq, %20, %7 : vector<8x64xi32>
    %22 = arith.ori %18, %21 : vector<8x64xi1>
    %c0_9 = arith.constant 0 : index
    %c0_10 = arith.constant 0 : index
    %23 = vector.load %arg2[%c0_9, %c0_10] : memref<8x2xf32, #tpu.memory_space<vmem>>, vector<8x2xf32>
    %cst_11 = arith.constant 1.000000e+00 : f32
    %cst_12 = arith.constant 0.000000e+00 : f32
    %24 = vector.broadcast %cst_11 : f32 to vector<8x64xf32>
    %25 = vector.broadcast %cst_12 : f32 to vector<8x64xf32>
    %26 = arith.select %22, %24, %25 : vector<8x64xi1>, vector<8x64xf32>
    %c55_i32 = arith.constant 55 : i32
    %27 = vector.broadcast %c55_i32 : i32 to vector<8x64xi32>
    %28 = arith.cmpi eq, %7, %27 : vector<8x64xi32>
    %29 = vector.extract_strided_slice %23 {offsets = [0, 0], sizes = [8, 1], strides = [1, 1]} : vector<8x2xf32> to vector<8x1xf32>
    %30 = vector.shape_cast %29 : vector<8x1xf32> to vector<8x1xf32>
    %31 = vector.broadcast %30 : vector<8x1xf32> to vector<8x64xf32>
    %32 = arith.select %28, %31, %26 : vector<8x64xi1>, vector<8x64xf32>
    %c56_i32 = arith.constant 56 : i32
    %33 = vector.broadcast %c56_i32 : i32 to vector<8x64xi32>
    %34 = arith.cmpi eq, %7, %33 : vector<8x64xi32>
    %35 = vector.extract_strided_slice %23 {offsets = [0, 1], sizes = [8, 1], strides = [1, 1]} : vector<8x2xf32> to vector<8x1xf32>
    %36 = vector.shape_cast %35 : vector<8x1xf32> to vector<8x1xf32>
    %37 = vector.broadcast %36 : vector<8x1xf32> to vector<8x64xf32>
    %38 = arith.select %34, %37, %32 : vector<8x64xi1>, vector<8x64xf32>
    %c57_i32 = arith.constant 57 : i32
    %39 = vector.broadcast %c57_i32 : i32 to vector<8x64xi32>
    %40 = arith.cmpi eq, %7, %39 : vector<8x64xi32>
    %cst_13 = arith.constant 1.000000e+00 : f32
    %41 = vector.broadcast %cst_13 : f32 to vector<8x64xf32>
    %42 = arith.select %40, %41, %38 : vector<8x64xi1>, vector<8x64xf32>
    %43 = arith.truncf %42 : vector<8x64xf32> to vector<8x64xbf16>
    %c0_14 = arith.constant 0 : index
    %c0_15 = arith.constant 0 : index
    %44 = vector.load %arg3[%c0_14, %c0_15] : memref<64x192xbf16, #tpu.memory_space<vmem>>, vector<64x192xbf16>
    %cst_16 = arith.constant dense<0.000000e+00> : vector<8x192xf32>
    %45 = tpu.matmul %43, %44, %cst_16 {dimension_numbers = #tpu.dot_dimension_numbers<[1], [0], [0], [1], [0, 0, 1, 1], [], []>} : vector<8x64xbf16>, vector<64x192xbf16>, vector<8x192xf32> -> vector<8x192xf32>
    %c1 = arith.constant 1 : index
    %c0_17 = arith.constant 0 : index
    %46 = vector.load %arg8[%c1, %c0_17] : memref<10x192xf32, #tpu.memory_space<vmem>>, vector<8x192xf32>
    tpu.vector_store %arg8[%c1, %c0_17], %45 {strides = array<i32>} : memref<10x192xf32, #tpu.memory_space<vmem>>, vector<8x192xf32>,
    %47 = tpu.iota {dimensions = array<i32: 0>} : vector<8x1xi32>
    %c8_i32 = arith.constant 8 : i32
    %c0_i32 = arith.constant 0 : i32
    %48 = arith.cmpi eq, %c8_i32, %c0_i32 : i32
    %c1_i32 = arith.constant 1 : i32
    %49 = arith.select %48, %c1_i32, %c8_i32 : i32
    %50 = vector.broadcast %49 : i32 to vector<8x1xi32>
    %51 = arith.remsi %47, %50 : vector<8x1xi32>
    %c0_i32_18 = arith.constant 0 : i32
    %52 = vector.broadcast %c0_i32_18 : i32 to vector<8x1xi32>
    %53 = arith.cmpi ne, %51, %52 : vector<8x1xi32>
    %c0_i32_19 = arith.constant 0 : i32
    %54 = vector.broadcast %c0_i32_19 : i32 to vector<8x1xi32>
    %55 = arith.cmpi slt, %51, %54 : vector<8x1xi32>
    %c0_i32_20 = arith.constant 0 : i32
    %56 = arith.cmpi slt, %49, %c0_i32_20 : i32
    %57 = vector.broadcast %56 : i1 to vector<8x1xi1>
    %58 = vector.broadcast %57 : vector<8x1xi1> to vector<8x1xi1>
    %59 = arith.xori %55, %58 : vector<8x1xi1>
    %60 = arith.andi %59, %53 : vector<8x1xi1>
    %61 = vector.broadcast %49 : i32 to vector<8x1xi32>
    %62 = arith.addi %51, %61 : vector<8x1xi32>
    %63 = arith.select %60, %62, %51 : vector<8x1xi1>, vector<8x1xi32>
    %c0_i32_21 = arith.constant 0 : i32
    %64 = vector.broadcast %c0_i32_21 : i32 to vector<8x1xi32>
    %65 = arith.cmpi eq, %63, %64 : vector<8x1xi32>
    %c7_i32 = arith.constant 7 : i32
    %66 = vector.broadcast %c7_i32 : i32 to vector<8x1xi32>
    %67 = arith.cmpi eq, %63, %66 : vector<8x1xi32>
    %c0_22 = arith.constant 0 : index
    %c0_23 = arith.constant 0 : index
    %68 = vector.load %arg4[%c0_22, %c0_23] : memref<1x64xf32, #tpu.memory_space<vmem>>, vector<1x64xf32>
    %c0_24 = arith.constant 0 : index
    %c0_25 = arith.constant 0 : index
    %69 = vector.load %arg8[%c0_24, %c0_25] : memref<10x192xf32, #tpu.memory_space<vmem>>, vector<8x64xf32>
    %c1_26 = arith.constant 1 : index
    %c64 = arith.constant 64 : index
    %70 = vector.load %arg8[%c1_26, %c64] : memref<10x192xf32, #tpu.memory_space<vmem>>, vector<8x64xf32>
    %c2 = arith.constant 2 : index
    %c128 = arith.constant 128 : index
    %71 = vector.load %arg8[%c2, %c128] : memref<10x192xf32, #tpu.memory_space<vmem>>, vector<8x64xf32>
    %cst_27 = arith.constant 0.000000e+00 : f32
    %72 = vector.shape_cast %65 : vector<8x1xi1> to vector<8x1xi1>
    %73 = vector.broadcast %72 : vector<8x1xi1> to vector<8x64xi1>
    %74 = vector.broadcast %cst_27 : f32 to vector<8x64xf32>
    %75 = arith.select %73, %74, %69 : vector<8x64xi1>, vector<8x64xf32>
    %76 = arith.addf %75, %70 : vector<8x64xf32>
    %cst_28 = arith.constant 0.000000e+00 : f32
    %77 = vector.shape_cast %67 : vector<8x1xi1> to vector<8x1xi1>
    %78 = vector.broadcast %77 : vector<8x1xi1> to vector<8x64xi1>
    %79 = vector.broadcast %cst_28 : f32 to vector<8x64xf32>
    %80 = arith.select %78, %79, %71 : vector<8x64xi1>, vector<8x64xf32>
    %81 = arith.addf %76, %80 : vector<8x64xf32>
    %82 = vector.broadcast %68 : vector<1x64xf32> to vector<8x64xf32>
    %83 = arith.addf %81, %82 : vector<8x64xf32>
    %cst_29 = arith.constant 0.000000e+00 : f32
    %84 = vector.broadcast %cst_29 : f32 to vector<8x64xf32>
    %85 = arith.cmpf oge, %83, %84 : vector<8x64xf32>
    %cst_30 = arith.constant 0.00999999977 : f32
    %86 = vector.broadcast %cst_30 : f32 to vector<8x64xf32>
    %87 = arith.mulf %86, %83 : vector<8x64xf32>
    %88 = arith.select %85, %83, %87 : vector<8x64xi1>, vector<8x64xf32>
    %89 = arith.truncf %88 : vector<8x64xf32> to vector<8x64xbf16>
    %c0_31 = arith.constant 0 : index
    %c0_32 = arith.constant 0 : index
    %90 = vector.load %arg5[%c0_31, %c0_32] : memref<64x96xbf16, #tpu.memory_space<vmem>>, vector<64x96xbf16>
    %cst_33 = arith.constant dense<0.000000e+00> : vector<8x96xf32>
    %91 = tpu.matmul %89, %90, %cst_33 {dimension_numbers = #tpu.dot_dimension_numbers<[1], [0], [0], [1], [0, 0, 1, 1], [], []>} : vector<8x64xbf16>, vector<64x96xbf16>, vector<8x96xf32> -> vector<8x96xf32>
    %c1_34 = arith.constant 1 : index
    %c0_35 = arith.constant 0 : index
    %92 = vector.load %arg9[%c1_34, %c0_35] : memref<10x96xf32, #tpu.memory_space<vmem>>, vector<8x96xf32>
    tpu.vector_store %arg9[%c1_34, %c0_35], %91 {strides = array<i32>} : memref<10x96xf32, #tpu.memory_space<vmem>>, vector<8x96xf32>,
    %c0_36 = arith.constant 0 : index
    %c0_37 = arith.constant 0 : index
    %93 = vector.load %arg6[%c0_36, %c0_37] : memref<1x32xf32, #tpu.memory_space<vmem>>, vector<1x32xf32>
    %c0_38 = arith.constant 0 : index
    %c0_39 = arith.constant 0 : index
    %94 = vector.load %arg9[%c0_38, %c0_39] : memref<10x96xf32, #tpu.memory_space<vmem>>, vector<8x32xf32>
    %c1_40 = arith.constant 1 : index
    %c32 = arith.constant 32 : index
    %95 = vector.load %arg9[%c1_40, %c32] : memref<10x96xf32, #tpu.memory_space<vmem>>, vector<8x32xf32>
    %c2_41 = arith.constant 2 : index
    %c64_42 = arith.constant 64 : index
    %96 = vector.load %arg9[%c2_41, %c64_42] : memref<10x96xf32, #tpu.memory_space<vmem>>, vector<8x32xf32>
    %cst_43 = arith.constant 0.000000e+00 : f32
    %97 = vector.shape_cast %65 : vector<8x1xi1> to vector<8x1xi1>
    %98 = vector.broadcast %97 : vector<8x1xi1> to vector<8x32xi1>
    %99 = vector.broadcast %cst_43 : f32 to vector<8x32xf32>
    %100 = arith.select %98, %99, %94 : vector<8x32xi1>, vector<8x32xf32>
    %101 = arith.addf %100, %95 : vector<8x32xf32>
    %cst_44 = arith.constant 0.000000e+00 : f32
    %102 = vector.shape_cast %67 : vector<8x1xi1> to vector<8x1xi1>
    %103 = vector.broadcast %102 : vector<8x1xi1> to vector<8x32xi1>
    %104 = vector.broadcast %cst_44 : f32 to vector<8x32xf32>
    %105 = arith.select %103, %104, %96 : vector<8x32xi1>, vector<8x32xf32>
    %106 = arith.addf %101, %105 : vector<8x32xf32>
    %107 = vector.broadcast %93 : vector<1x32xf32> to vector<8x32xf32>
    %108 = arith.addf %106, %107 : vector<8x32xf32>
    %c0_45 = arith.constant 0 : index
    %c0_46 = arith.constant 0 : index
    %109 = vector.load %arg7[%c0_45, %c0_46] : memref<8x32xf32, #tpu.memory_space<vmem>>, vector<8x32xf32>
    tpu.vector_store %arg7[%c0_45, %c0_46], %108 {strides = array<i32>} : memref<8x32xf32, #tpu.memory_space<vmem>>, vector<8x32xf32>,
    return
  }
  func.func @transform_0(%arg0: i32) -> (i32, i32) {
    %c0_i32 = arith.constant 0 : i32
    %c0_i32_0 = arith.constant 0 : i32
    return %arg0, %c0_i32 : i32, i32
  }
  func.func @transform_1(%arg0: i32) -> (i32, i32) {
    %c0_i32 = arith.constant 0 : i32
    %c0_i32_0 = arith.constant 0 : i32
    return %arg0, %c0_i32 : i32, i32
  }
  func.func @transform_2(%arg0: i32) -> (i32, i32) {
    %c0_i32 = arith.constant 0 : i32
    %c0_i32_0 = arith.constant 0 : i32
    %c0_i32_1 = arith.constant 0 : i32
    return %c0_i32, %c0_i32_0 : i32, i32
  }
  func.func @transform_3(%arg0: i32) -> (i32, i32) {
    %c0_i32 = arith.constant 0 : i32
    %c0_i32_0 = arith.constant 0 : i32
    %c0_i32_1 = arith.constant 0 : i32
    return %c0_i32, %c0_i32_0 : i32, i32
  }
  func.func @transform_4(%arg0: i32) -> (i32, i32) {
    %c0_i32 = arith.constant 0 : i32
    %c0_i32_0 = arith.constant 0 : i32
    %c0_i32_1 = arith.constant 0 : i32
    return %c0_i32, %c0_i32_0 : i32, i32
  }
  func.func @transform_5(%arg0: i32) -> (i32, i32) {
    %c0_i32 = arith.constant 0 : i32
    %c0_i32_0 = arith.constant 0 : i32
    %c0_i32_1 = arith.constant 0 : i32
    return %c0_i32, %c0_i32_0 : i32, i32
  }
  func.func @transform_6(%arg0: i32) -> (i32, i32) {
    %c0_i32 = arith.constant 0 : i32
    %c0_i32_0 = arith.constant 0 : i32
    return %arg0, %c0_i32 : i32, i32
  }
}

</mosaic_0001>

<bundles_post_ra>
// kernel: tpu_custom_call.1
= control target key start
LH: loop header
LB: loop body
LE: loop exit
PB: predicated region body
PF: predicated region fallthrough
CT: control target
= control target key end

     0   :  { %11 = vsyncpa [#allocation5], 0  ;;  %s1152_s0 = inlined_call_operand.vmem [shape: s32[16,4], index: 0, kind: input, shape index: {}]   ;;  %s1153_s1 = inlined_call_operand.vmem [shape: f32[16,2], index: 1, kind: input, shape index: {}]   ;;  %s1154_s2 = inlined_call_operand.hbm [shape: bf16[64,192], index: 2, kind: input, shape index: {}]   ;;  %s1155_s3 = inlined_call_operand.vmem [shape: f32[1,64], index: 3, kind: input, shape index: {}]   ;;  %s1156_s4 = inlined_call_operand.vmem [shape: bf16[64,96], index: 4, kind: input, shape index: {}]   ;;  %s1157_s5 = inlined_call_operand.vmem [shape: f32[1,32], index: 5, kind: input, shape index: {}]   ;;  %s1158_s6 = inlined_call_operand.hbm [shape: f32[16,32], index: 6, kind: output, shape index: {}]  }
   0x1   :  { %12 = vsyncpa [#allocation6], 0 }
   0x2   :  { %14 = vsyncpa [#allocation6 + $0x1], 0  ;;  %s963_s21 = smov 0   ;;  %s965_s22 = smov 0  }
   0x3   :  { %s967_s23 = smov 0   ;;  %s969_s24 = smov 0  }
   0x4 LB: > { %s984_s25 = sadd.s32 4294967295, %s914_s24   ;;  %s693_s26 = sadd.s32 4294967294, %s914_s24   ;;  %s914_s24 = sphi %s969_s24, %s1178_s24   ;;  %s910_s23 = sphi %s967_s23, %s1177_s23   ;;  %s906_s22 = sphi %s965_s22, %s1176_s22   ;;  %s902_s21 = sphi %s963_s21, %s1175_s21  }
   0x5   : > { %s988_s27 = sadd.s32 1, %s914_s24   ;;  %s163_s28 = sadd.s32 1, %s910_s23 }
   0x6   : > { %s160_s29 = ssub.s32 %s914_s24, %s988_s27  ;;  %p173_p0 = scmp.ne.s32.totalorder %s910_s23, %s906_s22 }
   0x7   : > { %p161_p1 = scmp.eq.s32.totalorder %s160_s29, 0  ;;  %p174_p2 = scmp.eq.s32.totalorder %s984_s25, 1 }
   0x8   : > { %p179_p3 = scmp.ne.s32.totalorder %s906_s22, %s902_s21  ;;  %p180_p4 = scmp.eq.s32.totalorder %s693_s26, 1 }
   0x9   : > { %s999_s30 = scalar_select %p161_p1, %s910_s23, %s163_s28  }
   0xa   : > { %p1001_p5 = por %p174_p2, %p173_p0  ;;  %p1005_p6 = por %p180_p4, %p179_p3 }
   0xb   : > { %p694_p7 = scmp.ge.s32.totalorder %s914_s24, 1  ;;  %p187_p8 = scmp.lt.s32.totalorder %s914_s24, 3 }
   0xc   : > { %s1162_s7 = scalar_select %p1001_p5, 1, 0 }
   0xd   : > { %s1163_s8 = scalar_select %p1005_p6, 1, 0 }
   0xe   : > { %p1159_p9 = scmp.eq.s32.totalorder %s984_s25, 0  ;;  %p1012_p10 = pnand %p694_p7, %p187_p8 }
   0xf   : > { %s916_s10 = smov [#allocation4]   ;;  %s820_s15 = scalar_lea.hbm %s1154_s2, 1024 }
  0x10   : > { %s1164_s9 = scalar_select %p1012_p10, 1, 0 }
  0x11   : > { %s199_s11 = sshll.u32 %s916_s10, 4  ;;  %p745_p11 = pneg %p1012_p10  ;;  %s200_s11 = int_to_ptr.vmem [resolvable:$true] %s199_s11 }
  0x12   : > { %p821_p13 = scmp.ne.s32.totalorder %s1154_s2, %s820_s15  ;;  %p827_p3 = scmp.lt.u32.totalorder %s820_s15, %s1154_s2 }
  0x13   : > { %p1020_p12 = pnand %p1159_p9, %p745_p11 }
  0x15   : > { %p822_p0 = pneg %p1020_p12 }
  0x17   : > { %p823_p1 = pnand %p822_p0, %p821_p13 }
  0x19   : > { %p824_p2 = pneg %p823_p1 }
  0x1b   : > { %p829_p4 = pnand %p827_p3, %p824_p2 }
  0x1d   : > { %832 = shalt.err (!%p829_p4)
}
  0x1e   : > { %s833_s20 = scalar_lea.vmem %s200_s11, 1024  ;;  %p841_p9 = scmp.lt.s32.totalorder %s200_s11, %s200_s11 }
  0x1f   : > { %p834_p7 = scmp.ne.s32.totalorder %s200_s11, %s833_s20  ;;  %p842_p6 = scmp.lt.s32.totalorder %s833_s20, %s833_s20 }
  0x21   : > { %p836_p8 = pnand %p834_p7, %p822_p0  ;;  %p843_p5 = por %p842_p6, %p841_p9 }
  0x23   : > { %p837_p11 = pneg %p836_p8 }
  0x25   : > { %p844_p10 = pnand %p843_p5, %p837_p11 }
  0x27   : > { %847 = shalt.err (!%p844_p10)
}
  0x28   : > { %s917_s26 = smov 128   ;;  %s918_s28 = smov 8  }
  0x29   : > { %748 = dma.hbm_to_vmem [thread:$0]  (!%p1020_p12), %s1154_s2, 1024, %s200_s11, [#allocation5], %s917_s26, %s917_s26, %s918_s28  }
  0x2a   : > { %p1166_p13 = scmp.ne.s32.totalorder %s1164_s9, 0 }
  0x2b   : > { %p1167_p1 = scmp.eq.s32.totalorder (!%p1166_p13), %s984_s25, 0 }
  0x2c   : > { %238 = sbr.rel (%p1166_p13) target bundleno = 908 (0x38c), region = 44 }
  0x33   : > { %893 = dma.done.wait (%p1167_p1), [#allocation5], 1024   ;;  %p1168_p0 = pmov %p1167_p1 }
  0x34   : > { %p271_p5 = scmp.lt.s32.totalorder %s984_s25, 1  ;;  %v919_v0 = vmov 2   ;;  %v920_v1 = vmov 0   ;;  %v804_v3 = vld [vmem:[#allocation4 + $0x4] ss:$8 sps:$4 sm:$0xff]   ;;  %v921_v7 = vmov 3   ;;  %v280_v9 = vlaneseq }
  0x35   : > { %895 = vsyncadd (%p1168_p0), [#allocation5], 4294966272  ;;  %801 = vset.pattern.permute.xlu1 %v919_v0  ;;  %799 = vset.pattern.permute.xlu0 %v920_v1  ;;  %v806_v4 = vld [vmem:[#allocation4] ss:$8 sps:$4 sm:$0xff]   ;;  %v807_v5 = vld [vmem:[#allocation4 + $0x14] ss:$8 sps:$4 sm:$0xff]  }
  0x36   : > { %s272_s12 = scalar_select %p271_p5, %s984_s25, 1  ;;  %416 = vmatprep.mubr.bf16.mxu0 %v920_v1  ;;  %384 = vmatprep.subr.bf16.mxu0 %v804_v3  ;;  %v809_v6 = vld [vmem:[#allocation4 + $0x10] ss:$8 sps:$4 sm:$0xff]   ;;  %v922_v8 = vmov 1   ;;  %v810_v10 = vld [vmem:[#allocation4 + $0x24] ss:$8 sps:$4 sm:$0xff]  }
  0x37   : > { %385 = vmatpush1.bf16.msra.mxu0 %v806_v4  ;;  %vm282_vm0 = vcmp.lt.s32.totalorder %v280_v9, 192  ;;  %v812_v12 = vld [vmem:[#allocation4 + $0x20] ss:$8 sps:$4 sm:$0xff]   ;;  %v923_v13 = vmov 0.0   ;;  %v813_v14 = vld [vmem:[#allocation4 + $0x34] ss:$8 sps:$4 sm:$0xff]  }
  0x38   : > { %s700_s13 = sshll.u32 %s272_s12, 3  ;;  %386 = vmatprep.subr.bf16.mxu0 %v807_v5  ;;  %284 = vst.msk [vmem:[#allocation2] ss:$8 sm:$0x3] %vm282_vm0, %v923_v13  ;;  %727 = vmatprep.subr.bf16.mxu1 %v923_v13  ;;  %v815_v15 = vld [vmem:[#allocation4 + $0x30] ss:$8 sps:$4 sm:$0xff]  }
  0x39   : > { %s274_s9 = scalar_lea.vmem %s1152_s0, %s700_s13  ;;  %s278_s17 = scalar_lea.vmem %s1153_s1, %s700_s13  ;;  %287 = vst.msk [vmem:[#allocation2 + $0x11] ss:$8 sm:$0x3] %vm282_vm0, %v923_v13  ;;  %v294_v18 = vand.u32 127, %v280_v9  ;;  %vm380_vm11 = vcmask 523264   ;;  %v816_v28 = vld [vmem:[%s1156_s4] sm:$0xff]  }
  0x3a   : > { %v292_v2 = vld [vmem:[%s274_s9] sm:$0xff]  ;;  %728 = vmatpush3.bf16.msra.mxu1 %v816_v28  ;;  %v817_v30 = vld [vmem:[%s1156_s4 + $0x8] sm:$0xff]   ;;  %vm432_vm12 = vcmask 523265   ;;  %vm435_vm13 = vcmask 516096   ;;  %v818_v36 = vld [vmem:[%s1156_s4 + $0x10] sm:$0xff]   ;;  %vm924_vm14 = vmmov 0  }
  0x3b   : > { %305 = vperm.xlu1 %801, %v292_v2   ;;  %296 = vperm.xlu0 %799, %v292_v2   ;;  %v314_v11 = vld [vmem:[%s278_s17] sm:$0xff]  ;;  %vm316_vm7 = vcmp.eq.s32.totalorder %v294_v18, 55  ;;  %vm323_vm9 = vcmp.eq.s32.totalorder %v294_v18, 56  ;;  %vm329_vm10 = vcmp.eq.s32.totalorder %v294_v18, 57  ;;  %v819_v37 = vld [vmem:[%s1156_s4 + $0x18] sm:$0xff]   ;;  %vm464_vm15 = vcmask 1046528  }
  0x3c   : > { %387 = vmatpush1.bf16.msra.mxu0 %v809_v6  ;;  %729 = vmatprep.subr.bf16.mxu1 %v923_v13  ;;  %s925_s13 = smov 64   ;;  %v438_v43 = vshrl.u32 %v280_v9, 7  ;;  %vm476_vm0 = vcmask 1045504   ;;  %v711_v56 = vld [vmem:[%s1155_s3] ss:$0 sm:$0xff]  ;;  %s926_s9 = smov 96  }
  0x3d   : > { %388 = vmatprep.subr.bf16.mxu0 %v810_v10  ;;  %735 = vmatprep.mubr.msk.bf16.mxu1 %vm924_vm14, %v923_v13  ;;  %s268_s15 = sand.u32 1, %s906_s22   ;;  %s719_s19 = sshll.u32 %s984_s25, 7 }
  0x3e   : > { %730 = vmatpush3.bf16.msra.mxu1 %v817_v30  ;;  %v443_v46 = vand.u32 7, %v438_v43  ;;  %s699_s16 = sshll.u32 %s268_s15, 3  ;;  %s1110_s10 = scalar_lea.hbm %s1158_s6, %s719_s19 }
  0x3f   : > { %802 = vset.pattern.permute.xlu1 %v921_v7  ;;  %800 = vset.pattern.permute.xlu0 %v922_v8  ;;  %s270_s20 = scalar_lea.vmem [#allocation7], %s699_s16  ;;  %s597_s12 = scalar_lea.sflag [#allocation6], %s268_s15 }
  0x40   : > { %310 = vperm.xlu1 %802, %v292_v2   ;;  %300 = vperm.xlu0 %800, %v292_v2   ;;  %s610_s26 = sshll.u32 %s270_s20, 4  ;;  %p1173_p9 = scmp.ne.s32.totalorder %s1162_s7, 0  ;;  %s1112_s26 = int_to_ptr.vmem [resolvable:$true] %s610_s26 }
  0x41   : > { %389 = vmatpush1.bf16.msra.mxu0 %v812_v12  ;;  %731 = vmatprep.subr.bf16.mxu1 %v923_v13  ;;  %s927_s25 = smov [#allocation7]  }
  0x42   : > { %390 = vmatprep.subr.bf16.mxu0 %v813_v14  ;;  %732 = vmatpush3.bf16.msra.mxu1 %v818_v36  ;;  %s852_s11 = sshll.u32 %s927_s25, 4  ;;  %s853_s11 = int_to_ptr.vmem [resolvable:$false] %s852_s11 }
  0x43   : > { %733 = vmatprep.subr.bf16.mxu1 %v923_v13  ;;  %s854_s14 = scalar_lea.vmem %s853_s11, 256  ;;  %p855_p2 = scmp.lt.s32.totalorder %s1112_s26, %s853_s11 }
  0x44   : > { %803 = vset.pattern.permute.xlu1 %v920_v1  ;;  %325 = vperm.xlu0 %800, %v314_v11  }
  0x45   : > { %319 = vperm.xlu1 %803, %v314_v11   ;;  %391 = vmatpush1.bf16.msra.mxu0 %v815_v15  ;;  %v717_v11 = vld [vmem:[%s1157_s5] ss:$0 sm:$0xff] }
  0x46   : > { %734 = vmatpush3.bf16.msra.mxu1 %v819_v37 }
  0xba   : > { %v306_v16 = vpop.permute.xlu1 %305  ;;  %v297_v17 = vpop.permute.xlu0 %296 }
  0xbb   : > { %vm298_vm1 = vcmp.eq.s32.totalorder %v297_v17, %v294_v18  ;;  %vm307_vm3 = vcmp.eq.s32.totalorder %v306_v16, %v294_v18 }
  0xbf   : > { %v311_v19 = vpop.permute.xlu1 %310  ;;  %v301_v20 = vpop.permute.xlu0 %300 }
  0xc0   : > { %vm302_vm2 = vcmp.eq.s32.totalorder %v301_v20, %v294_v18  ;;  %vm312_vm5 = vcmp.eq.s32.totalorder %v311_v19, %v294_v18 }
  0xc1   : > { %vm303_vm4 = vmor %vm298_vm1, %vm302_vm2  ;;  %vm1079_vm1 = vcmp.eq.s32.totalorder %v443_v46, 0  ;;  %vm1083_vm2 = vcmp.eq.s32.totalorder %v443_v46, 7 }
  0xc2   : > { %vm308_vm6 = vmor %vm303_vm4, %vm307_vm3  ;;  %vm289_vm4 = vcmask 778240  }
  0xc3   : > { %vm313_vm8 = vmor %vm308_vm6, %vm312_vm5  ;;  %v326_v23 = vpop.permute.xlu0 %325  ;;  %291 = vst.msk [vmem:[#allocation3 + $0x9] sm:$0x1] %vm289_vm4, %v923_v13  ;;  %vm569_vm5 = vcmask 785408   ;;  %vm594_vm6 = vcmask 261120  }
  0xc4   : > { %v320_v21 = vpop.permute.xlu1 %319  ;;  %v315_v22 = vsel %vm313_vm8, 1.0, %v923_v13  ;;  %290 = vst.msk [vmem:[#allocation3] sm:$0x1] %vm289_vm4, %v923_v13 }
  0xc5   : > { %v322_v24 = vsel %vm316_vm7, %v320_v21, %v315_v22 }
  0xc6   : > { %v328_v25 = vsel %vm323_vm9, %v326_v23, %v322_v24 }
  0xc7   : > { %v330_v26 = vsel %vm329_vm10, 1.0, %v328_v25 }
  0xc8   : > { %v331_v27 = vpack.c.bf16 %v330_v26, %v330_v26 }
  0xca   : > { %710 = vmatmul.mubr.msk.bf16.vlgmr.msra.gmra.mrb[0].mxu0 %vm380_vm11, %v331_v27 }
 0x19d   : > { %v418_v29 = vpop.f32.mrb[0].mxu0 }
 0x19e   : > { %v427_v31 = vrot.slane %v418_v29, 7  ;;  %v420_v32 = vpop.f32.mrb[1].mxu0 }
 0x19f   : > { %v428_v33 = vrot.slane %v420_v32, 7  ;;  %v422_v34 = vpop.f32.mrb[2].mxu0 }
 0x1a0   : > { %431 = vst [vmem:[#allocation2] sm:$0xfe] %v427_v31  ;;  %434 = vst [vmem:[#allocation2 + $0x10] sm:$0x1] %v427_v31  ;;  %v423_v35 = vpop.f32.mrb[3].mxu0 }
 0x1a1   : > { %433 = vst.msk [vmem:[#allocation2 + $0x8] sm:$0xfe] %vm432_vm12, %v428_v33 }
 0x1a2   : > { %436 = vst.msk [vmem:[#allocation2 + $0x18] sm:$0x1] %vm435_vm13, %v428_v33 }
 0x1a7   : > { %v455_v38 = vld [vmem:[#allocation2] sm:$0xfe]  ;;  %v456_v39 = vld [vmem:[#allocation2 + $0x10] sm:$0x1] }
 0x1a8   : > { %v465_v40 = vrot.slane %v455_v38, 1  ;;  %v466_v41 = vrot.slane %v456_v39, 1  ;;  %v457_v44 = vld [vmem:[#allocation2 + $0x8] sm:$0xfc]  ;;  %v454_v50 = vld [vmem:[#allocation2] sm:$0xff] }
 0x1a9   : > { %v458_v45 = vld [vmem:[#allocation2 + $0x18] sm:$0x3]  ;;  %v477_v47 = vrot.slane %v457_v44, 2  ;;  %v461_v54 = vsel %vm1079_vm1, 0.0, %v454_v50 }
 0x1aa   : > { %v467_v42 = vsel %vm464_vm15, %v465_v40, %v466_v41  ;;  %v478_v48 = vrot.slane %v458_v45, 2 }
 0x1ab   : > { %468 = vrot.lane.b32.xlu1 %v467_v42, %s925_s13 }
 0x1ac   : > { %v479_v52 = vsel %vm476_vm0, %v477_v47, %v478_v48 }
 0x1ad   : > { %v481_v57 = vsel %vm1083_vm2, 0.0, %v479_v52 }
 0x21d   : > { %v469_v53 = vpop.permute.xlu1 %468 }
 0x21e   : > { %v471_v55 = vadd.f32 %v469_v53, %v461_v54 }
 0x220   : > { %v482_v58 = vadd.f32 %v481_v57, %v471_v55 }
 0x222   : > { %v489_v59 = vadd.f32 %v711_v56, %v482_v58 }
 0x224   : > { %vm490_vm3 = vcmp.ge.f32.partialorder %v489_v59, 0.0  ;;  %v491_v60 = vmul.f32 0.01, %v489_v59 }
 0x226   : > { %v492_v61 = vsel %vm490_vm3, %v489_v59, %v491_v60 }
 0x227   : > { %v493_v62 = vpack.c.bf16 %v492_v61, %v492_v61 }
 0x229   : > { %736 = vmatmul.mubr.msk.bf16.vlgmr.msra.gmra.mrb[0].mxu1 %vm380_vm11, %v493_v62 }
 0x2fc   : > { %v563_v63 = vpop.f32.mrb[0].mxu1 }
 0x2fd   : > { %570 = vst.msk [vmem:[#allocation3 + $0x1] sm:$0xff] %vm569_vm5, %v563_v63  ;;  %v737_v0 = vpop.f32.mrb[1].mxu1 }
 0x2fe   : > { %v566_v1 = vpop.f32.mrb[2].mxu1 }
 0x2ff   : > { %v738_v2 = vpop.f32.mrb[3].mxu1 }
 0x304   : > { %v573_v3 = vld [vmem:[#allocation3 + $0x1] sm:$0xff] }
 0x305   : > { %v574_v4 = vld [vmem:[#allocation3 + $0x2] sm:$0xff]  ;;  %577 = vrot.lane.b32.xlu0 %v573_v3, %s926_s9 }
 0x306   : > { %v581_v5 = vsel %vm1083_vm2, 0.0, %v574_v4  ;;  %v572_v6 = vld [vmem:[#allocation3] sm:$0xff] }
 0x307   : > { %583 = vrot.lane.b32.xlu1 %v581_v5, %s925_s13  ;;  %v575_v8 = vsel %vm1079_vm1, 0.0, %v572_v6  ;;  %s848_s13 = scalar_lea.vmem %s1112_s26, 128 }
 0x308   : > { %p849_p6 = scmp.ne.s32.totalorder %s1112_s26, %s848_s13  ;;  %p856_p3 = scmp.lt.s32.totalorder %s854_s14, %s848_s13 }
 0x30a   : > { %p850_p10 = pnand %p849_p6, %p1173_p9  ;;  %p857_p4 = por %p856_p3, %p855_p2 }
 0x30c   : > { %p851_p12 = pneg %p850_p10 }
 0x30e   : > { %p858_p7 = pnand %p857_p4, %p851_p12 }
 0x377   : > { %v578_v7 = vpop.permute.xlu0 %577 }
 0x378   : > { %v580_v9 = vadd.f32 %v578_v7, %v575_v8 }
 0x379   : > { %v584_v10 = vpop.permute.xlu1 %583 }
 0x37a   : > { %v586_v12 = vadd.f32 %v584_v10, %v580_v9 }
 0x37c   : > { %v593_v13 = vadd.f32 %v717_v11, %v586_v12 }
 0x37e   : > { %595 = vst.msk [vmem:[%s270_s20] sm:$0xff] %vm594_vm6, %v593_v13 }
 0x37f   : > { %861 = shalt.err (!%p858_p7)
}
 0x380   : > { %s862_s9 = scalar_lea.hbm %s1110_s10, 128  ;;  %s866_s17 = scalar_lea.hbm %s1158_s6, 256 }
 0x381   : > { %p863_p8 = scmp.ne.s32.totalorder %s1110_s10, %s862_s9  ;;  %p867_p1 = scmp.lt.u32.totalorder %s1110_s10, %s1158_s6 }
 0x382   : > { %p868_p0 = scmp.lt.u32.totalorder %s866_s17, %s862_s9  ;;  %p870_p6 = scmp.lt.u32.totalorder %s862_s9, %s1110_s10 }
 0x383   : > { %p864_p11 = pnand %p863_p8, %p1173_p9 }
 0x384   : > { %p869_p5 = por %p868_p0, %p867_p1 }
 0x385   : > { %p865_p13 = pneg %p864_p11 }
 0x386   : > { %p871_p10 = por %p870_p6, %p869_p5 }
 0x388   : > { %p872_p12 = pnand %p871_p10, %p865_p13 }
 0x38a   : > { %875 = shalt.err (!%p872_p12)
}
 0x38b   : > { %743 = dma.vmem_to_hbm [thread:$0]  (%p1173_p9), %s1112_s26, 128, %s1110_s10, %s597_s12  }
 0x38c PF: > { %p755_p2 = scmp.ge.s32.totalorder %s914_s24, 2  ;;  %s622_s20 = sand.u32 1, %s902_s21  }
 0x38d   : > { %p1174_p3 = scmp.ne.s32.totalorder %s1163_s8, 0  ;;  %s623_s28 = scalar_lea.sflag [#allocation6], %s622_s20 }
 0x38f   : > { %p750_p4 = pnand %p755_p2, %p1174_p3 }
 0x391   : > { %897 = dma.done.wait (!%p750_p4), %s623_s28, 128  }
 0x392   : > { %899 = vsyncadd (!%p750_p4), %s623_s28, 4294967168  ;;  %p17_p7 = scmp.ge.s32.totalorder %s988_s27, 4   ;;  %s1175_s21 = smov %s906_s22 }
 0x393   : > { %s1176_s22 = smov %s910_s23  ;;  %s1177_s23 = smov %s999_s30 }
 0x394   : > { %s1178_s24 = smov %s988_s27  ;;  %19 = sbr.rel (!%p17_p7) target bundleno = 4 (0x4), region = 88 }
 0x39b   :  { %628 = vsyncpa [#allocation5], 1 }
 0x39c   :  { %630 = vsyncpa [#allocation5 + $0x1], 1 }
 0x39d   :  { %631 = vsyncpa [#allocation6], 1 }
 0x39e   :  { %633 = vsyncpa [#allocation6 + $0x1], 1 }

</bundles_post_ra>
